<compile_context>
chip_gen: v7x
topology: tpu7x:2x2x1
jax: 0.10.0
libtpu: 0.0.40
codegen_flags: <defaults>
</compile_context>

<pallas_src>
import jax
import jax.numpy as jnp
from jax.experimental import pallas as pl
from jax.experimental.pallas import tpu as pltpu


# ----------------------------- kernels ------------------------------------- #

def _packed_kernel(x_ref, w_ref, s_ref, b_ref, o_ref):
    # x_ref: (TMp, 128) VMEM  -- g = 128//F original rows packed per lane-dense row
    # w_ref: (1, 128)   VMEM  -- w_eff tiled g times
    # s_ref: (128, g)   VMEM  -- group-sum selector: s[l, j] = 1.0 iff l // F == j
    # b_ref: (1,)       SMEM  -- folded bias
    # o_ref: (TMp, g)   VMEM  -- o[i, j] = y[i*g + j]
    prod = x_ref[...] * w_ref[...]                       # VPU, full 128-lane width
    y = jnp.dot(prod, s_ref[...],                        # tiny MXU matmul does the
                preferred_element_type=jnp.float32)      # F-lane group sums (lane-major out)
    o_ref[...] = (y + b_ref[0]).astype(o_ref.dtype)


def _rowdot_kernel(x_ref, w_ref, b_ref, o_ref):
    # Fallback: x_ref (TM, F), w_ref (1, F), b_ref (1,) SMEM, o_ref (1, TM)
    y = jnp.sum(x_ref[...] * w_ref[...], axis=-1) + b_ref[0]   # VPU mul + lane reduce
    o_ref[...] = y.reshape(1, -1).astype(o_ref.dtype)          # lane-dense output slab


# ----------------------------- wrappers ------------------------------------ #

def _adaptive_rows(bytes_per_row, target_tile_bytes):
    """Rows per grid step: ~target bytes of x, rounded down to a multiple of 128."""
    rows = (int(target_tile_bytes) // max(int(bytes_per_row), 1)) // 128 * 128
    return max(rows, 128)


def _forward_packed(x, w_eff, b_eff, N, F, g, target_tile_bytes):
    Np = N // g
    x_packed = x.reshape(Np, 128)                 # free view of contiguous [N, F]
    w_tiled = jnp.tile(w_eff, (1, g))             # (1, 128)
    sel = jnp.repeat(jnp.eye(g, dtype=jnp.float32), F, axis=0)   # (128, g)

    tm = _adaptive_rows(128 * 4, target_tile_bytes)
    if Np <= tm:
        tm, grid = Np, 1                          # single block == full array (always legal)
    else:
        grid = pl.cdiv(Np, tm)                    # ragged final block clamped by Pallas;
                                                  # its outputs are out of bounds -> dropped

    out = pl.pallas_call(
        _packed_kernel,
        out_shape=jax.ShapeDtypeStruct((Np, g), jnp.float32),
        grid_spec=pltpu.PrefetchScalarGridSpec(
            num_scalar_prefetch=0,
            grid=(grid,),
            in_specs=[
                pl.BlockSpec((tm, 128), lambda i: (i, 0)),     # x tile (pipelined)
                pl.BlockSpec((1, 128), lambda i: (0, 0)),      # tiled weight row (resident)
                pl.BlockSpec((128, g), lambda i: (0, 0)),      # selector (resident)
                pl.BlockSpec(memory_space=pltpu.MemorySpace.SMEM),  # bias scalar
            ],
            out_specs=pl.BlockSpec((tm, g), lambda i: (i, 0)),
        ),
        compiler_params=pltpu.CompilerParams(
            dimension_semantics=("parallel",),
        ),
    )(x_packed, w_tiled, sel, b_eff)
    return out.reshape(N, 1)


def _forward_rowdot(x, w_eff, b_eff, N, F, target_tile_bytes):
    tm = _adaptive_rows(F * 4, target_tile_bytes)
    if N <= tm:
        tm, grid = N, 1
    else:
        grid = pl.cdiv(N, tm)
    n_pad = grid * tm                              # only the OUTPUT is padded (tiny);
                                                   # x itself is passed unpadded.

    out = pl.pallas_call(
        _rowdot_kernel,
        out_shape=jax.ShapeDtypeStruct((1, n_pad), jnp.float32),
        grid_spec=pltpu.PrefetchScalarGridSpec(
            num_scalar_prefetch=0,
            grid=(grid,),
            in_specs=[
                pl.BlockSpec((tm, F), lambda i: (i, 0)),       # ragged last block OK
                pl.BlockSpec((1, F), lambda i: (0, 0)),
                pl.BlockSpec(memory_space=pltpu.MemorySpace.SMEM),
            ],
            out_specs=pl.BlockSpec((1, tm), lambda i: (0, i)),
        ),
        compiler_params=pltpu.CompilerParams(
            dimension_semantics=("parallel",),
        ),
    )(x, w_eff, b_eff)
    return out.reshape(n_pad, 1)[:N]


def model_forward(x, fc1_w, fc1_b, fc2_w, fc2_b, *, target_tile_bytes=2 * 1024 * 1024):
    """x: [N, F] f32. fc1_w: [1, F], fc1_b: [1], fc2_w: [1, 1], fc2_b: [1] -> [N, 1] f32."""
    N, F = x.shape

    # Fold the 1->1 fc2 into fc1 on the tiny weights (wrapper-side, exact in f32).
    w2 = fc2_w.reshape(())
    w_eff = (fc1_w.reshape(1, F) * w2).astype(jnp.float32)                               # [1, F]
    b_eff = (fc1_b.reshape(()) * w2 + fc2_b.reshape(())).reshape(1).astype(jnp.float32)  # [1]

    g = 128 // F if (F <= 128 and 128 % F == 0) else 0
    if g > 1 and N % g == 0:
        return _forward_packed(x, w_eff, b_eff, N, F, g, target_tile_bytes)
    return _forward_rowdot(x, w_eff, b_eff, N, F, target_tile_bytes)


# ------------------------------- test --------------------------------------- #

if __name__ == "__main__":
    key = jax.random.PRNGKey(0)
    k_x, k_w1, k_b1, k_w2, k_b2 = jax.random.split(key, 5)

    F = 16  # nFeatures (inputSize)

    # PyTorch nn.Linear parameter layout: fc1.weight [1,F], fc1.bias [1]; fc2.* [1,1]/[1].
    bound1 = 1.0 / jnp.sqrt(F)
    fc1_w = jax.random.uniform(k_w1, (1, F), jnp.float32, -bound1, bound1)
    fc1_b = jax.random.uniform(k_b1, (1,), jnp.float32, -bound1, bound1)
    fc2_w = jax.random.uniform(k_w2, (1, 1), jnp.float32, -1.0, 1.0)
    fc2_b = jax.random.uniform(k_b2, (1,), jnp.float32, -1.0, 1.0)

    def ref_fn(x):
        return (x @ fc1_w.T + fc1_b) * fc2_w[0, 0] + fc2_b[0]

    # 1) Lane-packed path: N divisible by 128//F.
    x1 = jax.random.normal(k_x, (200, F), dtype=jnp.float32)
    out1 = jax.block_until_ready(model_forward(x1, fc1_w, fc1_b, fc2_w, fc2_b))
    assert out1.shape == (200, 1)
    assert jnp.allclose(out1, ref_fn(x1), atol=1e-5, rtol=1e-5)

    # 2) Fallback row-dot path: N not divisible by 128//F (no pad copy of x).
    x2 = jax.random.normal(k_x, (203, F), dtype=jnp.float32)
    out2 = jax.block_until_ready(model_forward(x2, fc1_w, fc1_b, fc2_w, fc2_b))
    assert out2.shape == (203, 1)
    assert jnp.allclose(out2, ref_fn(x2), atol=1e-5, rtol=1e-5)

    print("KERNEL_OK")
</pallas_src>

<mosaic_0001>
module attributes {stable_mosaic.version = 11 : i64} {
  func.func @_packed_kernel(%arg0: i32, %arg1: memref<25x128xf32, #tpu.memory_space<vmem>>, %arg2: memref<1x128xf32, #tpu.memory_space<vmem>>, %arg3: memref<128x8xf32, #tpu.memory_space<vmem>>, %arg4: memref<1xf32, #tpu.memory_space<smem>>, %arg5: memref<25x8xf32, #tpu.memory_space<vmem>>) attributes {dimension_semantics = [#tpu.dimension_semantics<parallel>], iteration_bounds = array<i64: 1>, scalar_prefetch = 0 : i64, scratch_operands = 0 : i64, tpu.core_type = #tpu.core_type<tc>, window_params = [{transform_indices = @transform_0, window_bounds = array<i64: 25, 128>}, {pipeline_mode = #tpu.pipeline_mode<synchronous>, transform_indices = @transform_1, window_bounds = array<i64: 1, 128>}, {pipeline_mode = #tpu.pipeline_mode<synchronous>, transform_indices = @transform_2, window_bounds = array<i64: 128, 8>}, {transform_indices = @transform_3, window_bounds = array<i64: 1>}, {transform_indices = @transform_4, window_bounds = array<i64: 25, 8>}]} {
    %c0 = arith.constant 0 : index
    %c0_0 = arith.constant 0 : index
    %0 = vector.load %arg1[%c0, %c0_0] : memref<25x128xf32, #tpu.memory_space<vmem>>, vector<25x128xf32>
    %c0_1 = arith.constant 0 : index
    %c0_2 = arith.constant 0 : index
    %1 = vector.load %arg2[%c0_1, %c0_2] : memref<1x128xf32, #tpu.memory_space<vmem>>, vector<1x128xf32>
    %2 = vector.broadcast %1 : vector<1x128xf32> to vector<25x128xf32>
    %3 = arith.mulf %0, %2 : vector<25x128xf32>
    %c0_3 = arith.constant 0 : index
    %c0_4 = arith.constant 0 : index
    %4 = vector.load %arg3[%c0_3, %c0_4] : memref<128x8xf32, #tpu.memory_space<vmem>>, vector<128x8xf32>
    %cst = arith.constant dense<0.000000e+00> : vector<25x8xf32>
    %5 = tpu.matmul %3, %4, %cst {dimension_numbers = #tpu.dot_dimension_numbers<[1], [0], [0], [1], [0, 0, 1, 1], [], []>} : vector<25x128xf32>, vector<128x8xf32>, vector<25x8xf32> -> vector<25x8xf32>
    %c0_5 = arith.constant 0 : index
    %6 = memref.load %arg4[%c0_5] : memref<1xf32, #tpu.memory_space<smem>>
    %7 = vector.broadcast %6 : f32 to vector<25x8xf32>
    %8 = arith.addf %5, %7 : vector<25x8xf32>
    %c0_6 = arith.constant 0 : index
    %c0_7 = arith.constant 0 : index
    %9 = vector.load %arg5[%c0_6, %c0_7] : memref<25x8xf32, #tpu.memory_space<vmem>>, vector<25x8xf32>
    tpu.vector_store %arg5[%c0_6, %c0_7], %8 {strides = array<i32>} : memref<25x8xf32, #tpu.memory_space<vmem>>, vector<25x8xf32>,
    return
  }
  func.func @transform_0(%arg0: i32) -> (i32, i32) {
    %c0_i32 = arith.constant 0 : i32
    %c0_i32_0 = arith.constant 0 : i32
    return %arg0, %c0_i32 : i32, i32
  }
  func.func @transform_1(%arg0: i32) -> (i32, i32) {
    %c0_i32 = arith.constant 0 : i32
    %c0_i32_0 = arith.constant 0 : i32
    %c0_i32_1 = arith.constant 0 : i32
    return %c0_i32, %c0_i32_0 : i32, i32
  }
  func.func @transform_2(%arg0: i32) -> (i32, i32) {
    %c0_i32 = arith.constant 0 : i32
    %c0_i32_0 = arith.constant 0 : i32
    %c0_i32_1 = arith.constant 0 : i32
    return %c0_i32, %c0_i32_0 : i32, i32
  }
  func.func @transform_3(%arg0: i32) -> i32 {
    %c0_i32 = arith.constant 0 : i32
    %c0_i32_0 = arith.constant 0 : i32
    return %c0_i32 : i32
  }
  func.func @transform_4(%arg0: i32) -> (i32, i32) {
    %c0_i32 = arith.constant 0 : i32
    %c0_i32_0 = arith.constant 0 : i32
    return %arg0, %c0_i32 : i32, i32
  }
}

</mosaic_0001>

<bundles_post_ra>
// kernel: tpu_custom_call.1
= control target key start
LH: loop header
LB: loop body
LE: loop exit
PB: predicated region body
PF: predicated region fallthrough
CT: control target
= control target key end

     0   :  { %vm136_vm0 = vcmask 64512   ;;  %vm140_vm1 = vcmask 57344   ;;  %s356_s2 = inlined_call_operand.vmem [shape: f32[128,8], index: 2, kind: input, shape index: {}]   ;;  %s357_s0 = inlined_call_operand.vmem [shape: f32[25,128], index: 0, kind: input, shape index: {}]   ;;  %s358_s1 = inlined_call_operand.vmem [shape: f32[1,128], index: 1, kind: input, shape index: {}]   ;;  %s359_s3 = inlined_call_operand.<no memory space> [shape: f32[1], index: 3, kind: input, shape index: {}]   ;;  %s360_s4 = inlined_call_operand.vmem [shape: f32[25,8], index: 4, kind: output, shape index: {}]  }
   0x1   :  { %v33_v0 = vld [vmem:[%s356_s2] sm:$0xff]  ;;  %v34_v1 = vld [vmem:[%s356_s2 + $0x8] sm:$0xff]  ;;  %v35_v2 = vld [vmem:[%s356_s2 + $0x10] sm:$0xff]  ;;  %v50_v33 = vstv %s359_s3 }
   0x2   :  { %v205_v3 = vpack.c.bf16 %v34_v1, %v33_v0  ;;  %v36_v4 = vld [vmem:[%s356_s2 + $0x18] sm:$0xff]  ;;  %v37_v6 = vld [vmem:[%s356_s2 + $0x20] sm:$0xff]  ;;  %v38_v7 = vld [vmem:[%s356_s2 + $0x28] sm:$0xff] }
   0x3   :  { %v209_v5 = vpack.c.bf16 %v36_v4, %v35_v2  ;;  %v213_v8 = vpack.c.bf16 %v38_v7, %v37_v6  ;;  %v18_v9 = vld [vmem:[%s357_s0] sm:$0xff]  ;;  %v39_v11 = vld [vmem:[%s356_s2 + $0x30] sm:$0xff]  ;;  %v40_v12 = vld [vmem:[%s356_s2 + $0x38] sm:$0xff] }
   0x4   :  { %206 = vmatprep.subr.bf16.mxu0 %v205_v3  ;;  %237 = vmatprep.subr.bf16.mxu1 %v205_v3  ;;  %v146_v10 = vld [vmem:[%s358_s1] ss:$0 sm:$0xff]  ;;  %v20_v14 = vld [vmem:[%s357_s0 + $0x10] sm:$0xff]  ;;  %v217_v16 = vpack.c.bf16 %v40_v12, %v39_v11  ;;  %v42_v18 = vld [vmem:[%s356_s2 + $0x48] sm:$0xff] }
   0x5   :  { %208 = vmatpush3.bf16.msra.mxu0 %v205_v3  ;;  %245 = vmatpush3.bf16.msra.mxu1 %v205_v3  ;;  %v29_v13 = vmul.f32 %v146_v10, %v18_v9  ;;  %v31_v15 = vmul.f32 %v146_v10, %v20_v14  ;;  %v41_v17 = vld [vmem:[%s356_s2 + $0x40] sm:$0xff]  ;;  %v43_v20 = vld [vmem:[%s356_s2 + $0x50] sm:$0xff]  ;;  %v44_v21 = vld [vmem:[%s356_s2 + $0x58] sm:$0xff] }
   0x6   :  { %210 = vmatprep.subr.bf16.mxu0 %v209_v5  ;;  %238 = vmatprep.subr.bf16.mxu1 %v209_v5  ;;  %v221_v19 = vpack.c.bf16 %v42_v18, %v41_v17  ;;  %v225_v22 = vpack.c.bf16 %v44_v21, %v43_v20  ;;  %v45_v23 = vld [vmem:[%s356_s2 + $0x60] sm:$0xff]  ;;  %v46_v24 = vld [vmem:[%s356_s2 + $0x68] sm:$0xff]  ;;  %v47_v26 = vld [vmem:[%s356_s2 + $0x70] sm:$0xff] }
   0x7   :  { %199 = vmatprep.mubr.f32.mxu0 %v29_v13  ;;  %202 = vmatprep.mubr.f32.mxu1 %v31_v15  ;;  %v229_v25 = vpack.c.bf16 %v46_v24, %v45_v23  ;;  %v48_v27 = vld [vmem:[%s356_s2 + $0x78] sm:$0xff]  ;;  %v19_v29 = vld [vmem:[%s357_s0 + $0x8] sm:$0xff] }
   0x8   :  { %v233_v28 = vpack.c.bf16 %v48_v27, %v47_v26  ;;  %v21_v30 = vld [vmem:[%s357_s0 + $0x18] sm:$0x1]  ;;  %v30_v31 = vmul.f32 %v146_v10, %v19_v29 }
   0x9   :  { %212 = vmatpush3.bf16.msra.mxu0 %v209_v5  ;;  %246 = vmatpush3.bf16.msra.mxu1 %v209_v5  ;;  %v32_v32 = vmul.f32 %v146_v10, %v21_v30 }
   0xa   :  { %214 = vmatprep.subr.bf16.mxu0 %v213_v8  ;;  %239 = vmatprep.subr.bf16.mxu1 %v213_v8 }
   0xd   :  { %216 = vmatpush3.bf16.msra.mxu0 %v213_v8  ;;  %247 = vmatpush3.bf16.msra.mxu1 %v213_v8 }
   0xe   :  { %218 = vmatprep.subr.bf16.mxu0 %v217_v16  ;;  %240 = vmatprep.subr.bf16.mxu1 %v217_v16 }
  0x11   :  { %220 = vmatpush3.bf16.msra.mxu0 %v217_v16  ;;  %248 = vmatpush3.bf16.msra.mxu1 %v217_v16 }
  0x12   :  { %222 = vmatprep.subr.bf16.mxu0 %v221_v19  ;;  %241 = vmatprep.subr.bf16.mxu1 %v221_v19 }
  0x15   :  { %224 = vmatpush3.bf16.msra.mxu0 %v221_v19  ;;  %249 = vmatpush3.bf16.msra.mxu1 %v221_v19 }
  0x16   :  { %226 = vmatprep.subr.bf16.mxu0 %v225_v22  ;;  %242 = vmatprep.subr.bf16.mxu1 %v225_v22 }
  0x19   :  { %228 = vmatpush3.bf16.msra.mxu0 %v225_v22  ;;  %250 = vmatpush3.bf16.msra.mxu1 %v225_v22 }
  0x1a   :  { %230 = vmatprep.subr.bf16.mxu0 %v229_v25  ;;  %243 = vmatprep.subr.bf16.mxu1 %v229_v25 }
  0x1d   :  { %232 = vmatpush3.bf16.msra.mxu0 %v229_v25  ;;  %251 = vmatpush3.bf16.msra.mxu1 %v229_v25 }
  0x1e   :  { %234 = vmatprep.subr.bf16.mxu0 %v233_v28  ;;  %244 = vmatprep.subr.bf16.mxu1 %v233_v28 }
  0x21   :  { %236 = vmatpush3.bf16.msra.mxu0 %v233_v28  ;;  %252 = vmatpush3.bf16.msra.mxu1 %v233_v28 }
  0x24   :  { %200 = vmatmul.mubr.f32.vlgmr.msra.gmra.mrb[0].mxu0 %v30_v31  ;;  %203 = vmatmul.mubr.f32.vlgmr.msra.gmra.mrb[0].mxu1 %v32_v32 }
  0xf7   :  { %v201_v34 = vpop.f32.mrb[0].mxu0  ;;  %v204_v35 = vpop.f32.mrb[0].mxu1 }
  0xf8   :  { %v123_v36 = vadd.f32 %v201_v34, %v50_v33  ;;  %v133_v37 = vadd.f32 %v204_v35, %v50_v33  ;;  %v117_v38 = vpop.f32.mrb[1].mxu0  ;;  %v127_v39 = vpop.f32.mrb[1].mxu1 }
  0xf9   :  { %v118_v40 = vadd.f32 %v117_v38, %v50_v33  ;;  %v128_v41 = vadd.f32 %v127_v39, %v50_v33 }
  0xfa   :  { %138 = vst.msk [vmem:[%s360_s4 + $0x8] sm:$0xff] %vm136_vm0, %v123_v36 }
  0xfb   :  { %141 = vst.msk [vmem:[%s360_s4 + $0x18] sm:$0x1] %vm140_vm1, %v133_v37 }
  0xfc   :  { %137 = vst.msk [vmem:[%s360_s4] sm:$0xff] %vm136_vm0, %v118_v40  ;;  %139 = vst.msk [vmem:[%s360_s4 + $0x10] sm:$0xff] %vm136_vm0, %v128_v41 }

</bundles_post_ra>
